<compile_context>
chip_gen: v7x
topology: tpu7x:2x2x1
jax: 0.10.0
libtpu: 0.0.40
codegen_flags: <defaults>
</compile_context>

<pallas_src>
import functools

import jax
import jax.numpy as jnp
from jax.experimental import pallas as pl
from jax.experimental.pallas import tpu as pltpu

_SUBLANE = 8  # f32 sublane granularity


def _round_up(x, m):
    return ((x + m - 1) // m) * m


def _pick_bt(batch, block_batch):
    """Row-tile size: multiple of 8, aiming for >=2 grid steps on non-trivial batches."""
    if batch <= _SUBLANE:
        return batch                                  # single full block (always legal)
    bt = _round_up(pl.cdiv(batch, 2), _SUBLANE)       # >=2 steps -> both v7x TCs get work
    return max(_SUBLANE, min(block_batch, bt))


# ----------------------------- kernels ---------------------------------------


def _affine_kernel(x_ref, w_ref, b_ref, o_ref):
    # Fused form: y = x @ W_eff + b_eff  (W_eff already [in, out]: no transpose)
    y = jnp.dot(x_ref[...], w_ref[...], preferred_element_type=jnp.float32)
    o_ref[...] = (y + b_ref[...]).astype(o_ref.dtype)


def _two_layer_kernel(x_ref, w1_ref, b1_ref, w2_ref, b2_ref, o_ref):
    # Un-fused fallback: hidden activation never leaves VMEM/vregs.
    h = jnp.dot(x_ref[...], w1_ref[...], preferred_element_type=jnp.float32) + b1_ref[...]
    y = jnp.dot(h, w2_ref[...], preferred_element_type=jnp.float32) + b2_ref[...]
    o_ref[...] = y.astype(o_ref.dtype)


# --------------------------- pallas_call wrapper ------------------------------


def _batched_affine_call(kernel, x, param_arrays, out_f, block_batch):
    batch, in_f = x.shape
    bt = _pick_bt(batch, block_batch)
    grid = (pl.cdiv(batch, bt),)  # last tile may be ragged; OOB output rows are masked

    # Parameters are small and resident: full-array blocks, same block every step.
    param_specs = [pl.BlockSpec(p.shape, lambda i: (0, 0)) for p in param_arrays]

    return pl.pallas_call(
        kernel,
        out_shape=jax.ShapeDtypeStruct((batch, out_f), x.dtype),
        grid_spec=pltpu.PrefetchScalarGridSpec(
            num_scalar_prefetch=0,
            grid=grid,
            in_specs=[pl.BlockSpec((bt, in_f), lambda i: (i, 0))] + param_specs,
            out_specs=pl.BlockSpec((bt, out_f), lambda i: (i, 0)),
        ),
        compiler_params=pltpu.CompilerParams(
            dimension_semantics=("parallel",),  # batch axis shardable across v7x's 2 TCs
        ),
    )(x, *param_arrays)


@functools.partial(jax.jit, static_argnames=("block_batch",))
def _apply_fused(x, w_eff, b_eff, *, block_batch=2048):
    return _batched_affine_call(_affine_kernel, x, (w_eff, b_eff), w_eff.shape[1], block_batch)


@functools.partial(jax.jit, static_argnames=("block_batch",))
def _apply_two(x, w1t, b1, w2t, b2, *, block_batch=2048):
    return _batched_affine_call(_two_layer_kernel, x, (w1t, b1, w2t, b2), w2t.shape[1], block_batch)


# ------------------------------ public API ------------------------------------


def fuse_params(w1, b1, w2, b2):
    """Call ONCE (outside the hot path). Collapses the two Linear layers when it is a win."""
    hid, in_f = w1.shape
    out_f = w2.shape[0]
    hp = jax.lax.Precision.HIGHEST  # strict f32 parity with the PyTorch reference
    if in_f * out_f <= in_f * hid + hid * out_f:
        # (x @ W1^T + b1) @ W2^T + b2 == x @ (W1^T W2^T) + (b1 W2^T + b2)
        w_eff = jnp.dot(w1.T, w2.T, precision=hp)                        # [in, out]
        b_eff = (jnp.dot(b1, w2.T, precision=hp) + b2).reshape(1, out_f)  # [1, out]
        return ("fused", (w_eff, b_eff))
    # Small hidden bottleneck: fusion would enlarge the weight -> keep two layers.
    return ("two", (w1.T, b1.reshape(1, hid), w2.T, b2.reshape(1, out_f)))


def linear_reg_forward(x, params, *, block_batch=2048):
    """Forward of LinearReg given precomputed params from fuse_params()."""
    kind, p = params
    if kind == "fused":
        return _apply_fused(x, *p, block_batch=block_batch)
    return _apply_two(x, *p, block_batch=block_batch)


# ------------------------------- self-test ------------------------------------


def _torch_style_init(key, input_shape, hidden_units, output_shape):
    k1, k2, k3, k4 = jax.random.split(key, 4)
    s1 = 1.0 / jnp.sqrt(input_shape)
    s2 = 1.0 / jnp.sqrt(hidden_units)
    w1 = jax.random.uniform(k1, (hidden_units, input_shape), jnp.float32, -s1, s1)
    b1 = jax.random.uniform(k2, (hidden_units,), jnp.float32, -s1, s1)
    w2 = jax.random.uniform(k3, (output_shape, hidden_units), jnp.float32, -s2, s2)
    b2 = jax.random.uniform(k4, (output_shape,), jnp.float32, -s2, s2)
    return w1, b1, w2, b2


def _ref(x, w1, b1, w2, b2):
    hp = jax.lax.Precision.HIGHEST
    return jnp.dot(jnp.dot(x, w1.T, precision=hp) + b1, w2.T, precision=hp) + b2


if __name__ == "__main__":
    batch, input_shape, hidden_units, output_shape = 8, 32, 32, 8

    key = jax.random.PRNGKey(0)
    kx, kp = jax.random.split(key)
    x = jax.random.normal(kx, (batch, input_shape), jnp.float32)
    w1, b1, w2, b2 = _torch_style_init(kp, input_shape, hidden_units, output_shape)

    params = fuse_params(w1, b1, w2, b2)  # one-time; hot path is a single pallas_call
    assert params[0] == "fused"

    out = jax.block_until_ready(linear_reg_forward(x, params))
    assert out.shape == (batch, output_shape)
    assert jnp.allclose(out, _ref(x, w1, b1, w2, b2), atol=1e-4, rtol=1e-4)

    # Ragged, multi-step-grid batch (OOB-masked last tile; no pad copy of x).
    big_batch = 1030
    xb = jax.random.normal(kx, (big_batch, input_shape), jnp.float32)
    out_b = jax.block_until_ready(linear_reg_forward(xb, params))
    assert out_b.shape == (big_batch, output_shape)
    assert jnp.allclose(out_b, _ref(xb, w1, b1, w2, b2), atol=1e-4, rtol=1e-4)

    # Config where fusion is NOT a win (hidden bottleneck) -> two-matmul kernel path.
    w1s, b1s, w2s, b2s = _torch_style_init(kp, 32, 8, 32)
    params_two = fuse_params(w1s, b1s, w2s, b2s)
    assert params_two[0] == "two"
    out_t = jax.block_until_ready(linear_reg_forward(x, params_two))
    assert out_t.shape == (batch, 32)
    assert jnp.allclose(out_t, _ref(x, w1s, b1s, w2s, b2s), atol=1e-4, rtol=1e-4)

    print("KERNEL_OK")
</pallas_src>

<mosaic_0001>
module attributes {stable_mosaic.version = 11 : i64} {
  func.func @_affine_kernel(%arg0: i32, %arg1: memref<8x32xf32, #tpu.memory_space<vmem>>, %arg2: memref<32x8xf32, #tpu.memory_space<vmem>>, %arg3: memref<1x8xf32, #tpu.memory_space<vmem>>, %arg4: memref<8x8xf32, #tpu.memory_space<vmem>>) attributes {dimension_semantics = [#tpu.dimension_semantics<parallel>], iteration_bounds = array<i64: 1>, scalar_prefetch = 0 : i64, scratch_operands = 0 : i64, tpu.core_type = #tpu.core_type<tc>, window_params = [{transform_indices = @transform_0, window_bounds = array<i64: 8, 32>}, {pipeline_mode = #tpu.pipeline_mode<synchronous>, transform_indices = @transform_1, window_bounds = array<i64: 32, 8>}, {pipeline_mode = #tpu.pipeline_mode<synchronous>, transform_indices = @transform_2, window_bounds = array<i64: 1, 8>}, {transform_indices = @transform_3, window_bounds = array<i64: 8, 8>}]} {
    %c0 = arith.constant 0 : index
    %c0_0 = arith.constant 0 : index
    %0 = vector.load %arg1[%c0, %c0_0] : memref<8x32xf32, #tpu.memory_space<vmem>>, vector<8x32xf32>
    %c0_1 = arith.constant 0 : index
    %c0_2 = arith.constant 0 : index
    %1 = vector.load %arg2[%c0_1, %c0_2] : memref<32x8xf32, #tpu.memory_space<vmem>>, vector<32x8xf32>
    %cst = arith.constant dense<0.000000e+00> : vector<8x8xf32>
    %2 = tpu.matmul %0, %1, %cst {dimension_numbers = #tpu.dot_dimension_numbers<[1], [0], [0], [1], [0, 0, 1, 1], [], []>} : vector<8x32xf32>, vector<32x8xf32>, vector<8x8xf32> -> vector<8x8xf32>
    %c0_3 = arith.constant 0 : index
    %c0_4 = arith.constant 0 : index
    %3 = vector.load %arg3[%c0_3, %c0_4] : memref<1x8xf32, #tpu.memory_space<vmem>>, vector<1x8xf32>
    %4 = vector.broadcast %3 : vector<1x8xf32> to vector<8x8xf32>
    %5 = arith.addf %2, %4 : vector<8x8xf32>
    %c0_5 = arith.constant 0 : index
    %c0_6 = arith.constant 0 : index
    %6 = vector.load %arg4[%c0_5, %c0_6] : memref<8x8xf32, #tpu.memory_space<vmem>>, vector<8x8xf32>
    tpu.vector_store %arg4[%c0_5, %c0_6], %5 {strides = array<i32>} : memref<8x8xf32, #tpu.memory_space<vmem>>, vector<8x8xf32>,
    return
  }
  func.func @transform_0(%arg0: i32) -> (i32, i32) {
    %c0_i32 = arith.constant 0 : i32
    %c0_i32_0 = arith.constant 0 : i32
    return %arg0, %c0_i32 : i32, i32
  }
  func.func @transform_1(%arg0: i32) -> (i32, i32) {
    %c0_i32 = arith.constant 0 : i32
    %c0_i32_0 = arith.constant 0 : i32
    %c0_i32_1 = arith.constant 0 : i32
    return %c0_i32, %c0_i32_0 : i32, i32
  }
  func.func @transform_2(%arg0: i32) -> (i32, i32) {
    %c0_i32 = arith.constant 0 : i32
    %c0_i32_0 = arith.constant 0 : i32
    %c0_i32_1 = arith.constant 0 : i32
    return %c0_i32, %c0_i32_0 : i32, i32
  }
  func.func @transform_3(%arg0: i32) -> (i32, i32) {
    %c0_i32 = arith.constant 0 : i32
    %c0_i32_0 = arith.constant 0 : i32
    return %arg0, %c0_i32 : i32, i32
  }
}

</mosaic_0001>

<bundles_post_ra>
// kernel: _apply_fused.1
= control target key start
LH: loop header
LB: loop body
LE: loop exit
PB: predicated region body
PF: predicated region fallthrough
CT: control target
= control target key end

     0   :  { %v169_v3 = vmov 0.0|0.0   ;;  %vm170_vm0 = vmmov 0   ;;  %v171_v6 = vmov 0.0   ;;  %s223_s0 = inlined_call_operand.vmem [shape: f32[8,32], index: 0, kind: input, shape index: {}]   ;;  %s224_s1 = inlined_call_operand.vmem [shape: f32[32,8], index: 1, kind: input, shape index: {}]   ;;  %s225_s2 = inlined_call_operand.vmem [shape: f32[1,8], index: 2, kind: input, shape index: {}]   ;;  %s226_s3 = inlined_call_operand.hbm [shape: f32[8,8], index: 3, kind: output, shape index: {}]  }
   0x1   :  { %v16_v0 = vld [vmem:[%s224_s1] sm:$0xff]  ;;  %v17_v1 = vld [vmem:[%s224_s1 + $0x8] sm:$0xff]  ;;  %v18_v2 = vld [vmem:[%s224_s1 + $0x10] sm:$0xff]  ;;  %135 = vmatprep.subr.bf16.mxu0 %v169_v3  ;;  %132 = vmatprep.mubr.msk.f32.mxu0 %vm170_vm0, %v171_v6 }
   0x2   :  { %v136_v4 = vpack.c.bf16 %v17_v1, %v16_v0  ;;  %v19_v5 = vld [vmem:[%s224_s1 + $0x18] sm:$0xff] }
   0x3   :  { %8 = vsyncpa [#allocation3], 0  ;;  %v139_v7 = vpack.c.bf16 %v19_v5, %v18_v2  ;;  %v15_v8 = vld [vmem:[%s223_s0] sm:$0xff]  ;;  %vm27_vm1 = vcmask 261120   ;;  %s172_s24 = smov [#allocation2]   ;;  %vm101_vm2 = vcmask 64512  }
   0x4   :  { %137 = vmatpush3.bf16.msra.mxu0 %v136_v4  ;;  %v117_v9 = vld [vmem:[%s225_s2] ss:$0 sm:$0xff]  ;;  %s109_s1 = sshll.u32 %s172_s24, 4  ;;  %s110_s1 = int_to_ptr.vmem [resolvable:$true] %s109_s1 }
   0x5   :  { %138 = vmatprep.subr.bf16.mxu0 %v169_v3  ;;  %s145_s25 = scalar_lea.vmem %s110_s1, 128  ;;  %p150_p1 = scmp.lt.s32.totalorder %s110_s1, %s110_s1 }
   0x6   :  { %p146_p0 = scmp.ne.s32.totalorder %s110_s1, %s145_s25  ;;  %p151_p2 = scmp.lt.s32.totalorder %s145_s25, %s145_s25 }
   0x8   :  { %140 = vmatpush3.bf16.msra.mxu0 %v139_v7  ;;  %p152_p3 = por %p151_p2, %p150_p1 }
   0xa   :  { %p153_p4 = pnand %p152_p3, %p146_p0 }
   0xb   :  { %133 = vmatmul.mubr.msk.f32.vlgmr.msra.gmra.mrb[0].mxu0 %vm27_vm1, %v15_v8 }
  0xde   :  { %v97_v10 = vpop.f32.mrb[0].mxu0 }
  0xdf   :  { %v98_v11 = vadd.f32 %v117_v9, %v97_v10  ;;  %v134_v12 = vpop.f32.mrb[1].mxu0 }
  0xe1   :  { %102 = vst.msk [vmem:[#allocation2] sm:$0xff] %vm101_vm2, %v98_v11 }
  0xe2   :  { %156 = shalt.err (!%p153_p4)
}
  0xe3   :  { %s157_s27 = scalar_lea.hbm %s226_s3, 128 }
  0xe4   :  { %p158_p5 = scmp.ne.s32.totalorder %s226_s3, %s157_s27  ;;  %p161_p6 = scmp.lt.u32.totalorder %s157_s27, %s226_s3 }
  0xe6   :  { %p163_p7 = pnand %p161_p6, %p158_p5 }
  0xe8   :  { %166 = shalt.err (!%p163_p7)
}
  0xe9   :  { %112 = dma.vmem_to_hbm [thread:$0]  %s110_s1, 128, %s226_s3, [#allocation3]  }
  0xea   :  { %167 = dma.done.wait [#allocation3], 128  }
  0xeb   :  { %168 = vsyncadd [#allocation3], 4294967168 }
  0xec   :  { %116 = vsyncpa [#allocation3], 1 }

</bundles_post_ra>
